<compile_context>
chip_gen: v5e
topology: v5e:2x2
jax: 0.10.0
libtpu: 0.0.40
codegen_flags: <defaults>
</compile_context>

<pallas_src>
import functools
import math

import jax
import jax.numpy as jnp
from jax import lax
from jax.experimental import pallas as pl
from jax.experimental.pallas import tpu as pltpu


# ---------------------------------------------------------------------------
# padding helpers (JAX mirror of the module's get_padding / apply_padding and
# of nn.Conv2d(padding='same'))
# ---------------------------------------------------------------------------
def _get_padding(kernel, dilations, axis):
    extra = (kernel[axis] - 1) * dilations[axis]
    return (extra // 2, extra - extra // 2)


def _apply_module_padding(x, kernel, dilation, padding):
    """Spatially pads NCHW `x` so that the remaining conv is VALID."""
    if padding in ("VALID", "VALID_H", "VALID_W"):
        hp = _get_padding(kernel, dilation, 0) if padding in ("VALID", "VALID_H") else (0, 0)
        wp = _get_padding(kernel, dilation, 1) if padding in ("VALID", "VALID_W") else (0, 0)
        return jnp.pad(x, ((0, 0), (0, 0), hp, wp), mode="reflect")
    if padding == "same":
        hp = _get_padding(kernel, dilation, 0)
        wp = _get_padding(kernel, dilation, 1)
        return jnp.pad(x, ((0, 0), (0, 0), hp, wp))      # zero pad (PyTorch 'same')
    if padding in ("valid", "VALID_ORIGINAL", None):
        return x
    raise ValueError(f"unsupported padding: {padding!r}")


def _round_up(v, m):
    return ((v + m - 1) // m) * m


# ---------------------------------------------------------------------------
# tile sizing: biggest flat-spatial tile that keeps the working set well under
# the 32 MiB scoped-VMEM default (v5e/v6e/v7x) and v7x's 64 MiB physical VMEM.
# ---------------------------------------------------------------------------
_VMEM_BUDGET_BYTES = 20 * 1024 * 1024


def _choose_tile_m(m_out, cip, cop, halo, n_taps, out_bytes):
    tm = min(_round_up(m_out, 128), 2048)
    while tm > 128:
        tmh = _round_up(tm + halo, 128)
        vmem = (2 * cip * tmh * 2              # double-buffered bf16 x tile
                + cop * tm * 4                 # f32 accumulator scratch
                + 2 * cop * tm * out_bytes     # double-buffered output block
                + 2 * n_taps * cop * cip * 2)  # resident bf16 weights (x2 buffers)
        if vmem <= _VMEM_BUDGET_BYTES:
            break
        tm -= 128
    return tm


# ---------------------------------------------------------------------------
# Pallas kernel: one (batch, flat-spatial-tile) block of the VALID conv on a
# spatially pre-padded, channel-padded, flattened NCHW input.
# ---------------------------------------------------------------------------
def _conv2d_kernel(w_ref, b_ref, x_hbm, o_ref, xbuf, acc_ref, sem,
                   *, kh, kw, dh, dw, wp, tm, tmh):
    # w_ref : (kh*kw, Cop, Cip) bf16   per-tap weight matrices (resident in VMEM)
    # b_ref : (Cop, 1)          f32
    # x_hbm : (N, Cip, Lpad)    bf16   flattened padded input, stays in HBM
    # o_ref : (1, Cop, tm)             output block (flat spatial on lanes)
    # xbuf  : (2, Cip, tmh)     bf16   double-buffered input tile (VMEM scratch)
    # acc   : (Cop, tm)         f32    accumulator (VMEM scratch)
    n = pl.program_id(0)
    t = pl.program_id(1)
    nt = pl.num_programs(1)
    slot = t % 2

    def start_fetch(tile_idx, buf_idx):
        pltpu.make_async_copy(
            x_hbm.at[n, :, pl.ds(tile_idx * tm, tmh)],
            xbuf.at[buf_idx],
            sem.at[buf_idx],
        ).start()

    @pl.when(t == 0)                      # prime the first tile of this image
    def _():
        start_fetch(0, 0)

    @pl.when(t + 1 < nt)                  # prefetch next tile into the other slot
    def _():
        start_fetch(t + 1, 1 - slot)

    # wait for the tile we are about to compute on
    pltpu.make_async_copy(
        x_hbm.at[n, :, pl.ds(0, tmh)], xbuf.at[slot], sem.at[slot]
    ).wait()

    xs = xbuf.at[slot]                    # (Cip, tmh) ref view -- no full load
    for i in range(kh):                   # static unroll over the kh*kw taps
        for j in range(kw):
            q = i * kw + j
            off = i * dh * wp + j * dw    # static flat shift for this tap
            contrib = jnp.dot(w_ref[q], xs[:, off:off + tm],
                              preferred_element_type=jnp.float32)
            if q == 0:
                acc_ref[...] = contrib    # overwrite -> no separate zeroing pass
            else:
                acc_ref[...] += contrib

    res = acc_ref[...] + b_ref[...]       # (Cop, tm) + (Cop, 1) lane-broadcast
    o_ref[...] = res.astype(o_ref.dtype)[None]


# ---------------------------------------------------------------------------
# wrapper
# ---------------------------------------------------------------------------
def conv2d_forward(x, w, b, *, padding="same", stride=(1, 1), dilation=(1, 1),
                   out_dtype=jnp.float32):
    """x: (N, C_in, H, W) f32; w: (C_out, C_in, KH, KW) f32; b: (C_out,) f32."""
    if isinstance(stride, int):
        stride = (stride, stride)
    if isinstance(dilation, int):
        dilation = (dilation, dilation)
    if tuple(stride) != (1, 1):
        # TODO(synk): stride > 1 is not implemented (the module default is stride=(1,1)).
        raise NotImplementedError("conv2d_forward currently supports stride=(1,1) only")

    N, C_in, H, W = x.shape
    C_out, _, KH, KW = w.shape
    dh, dw = dilation
    n_taps = KH * KW

    # bf16 early so every subsequent wrapper pass moves half the bytes.
    xb = x.astype(jnp.bfloat16)
    xb = _apply_module_padding(xb, (KH, KW), (dh, dw), padding)   # NCHW spatial pad
    Hp, Wp = xb.shape[2], xb.shape[3]
    OH = Hp - dh * (KH - 1)
    OW = Wp - dw * (KW - 1)

    # channels padded to a sublane multiple only (no 128-wide channel padding).
    Cip = _round_up(C_in, 8)
    Cop = _round_up(C_out, 8)

    m_out = OH * Wp                                   # flat outputs incl. junk cols
    halo = (KH - 1) * dh * Wp + (KW - 1) * dw
    out_bytes = jnp.dtype(out_dtype).itemsize
    tm = _choose_tile_m(m_out, Cip, Cop, halo, n_taps, out_bytes)
    nt = (m_out + tm - 1) // tm
    m_pad = nt * tm
    tmh = _round_up(tm + halo, 128)                   # x tile incl. halo
    l_pad = (nt - 1) * tm + tmh                       # flat length the last DMA needs
    # TODO(synk): for very large channel counts (resident weights > VMEM budget)
    # an extra C_out grid axis would be needed; typical layers (<=512 ch) fit.

    # flattened, channel- and length-padded bf16 input (stays NCHW-ordered).
    xb = jnp.pad(xb, ((0, 0), (0, Cip - C_in), (0, 0), (0, 0)))
    x_flat = xb.reshape(N, Cip, Hp * Wp)
    x_flat = jnp.pad(x_flat, ((0, 0), (0, 0), (0, l_pad - Hp * Wp)))

    # per-tap weight matrices: (KH*KW, Cop, Cip), bf16.  w_taps[q] = w[:, :, i, j].
    w_taps = jnp.transpose(w.astype(jnp.bfloat16), (2, 3, 0, 1)).reshape(n_taps, C_out, C_in)
    w_taps = jnp.pad(w_taps, ((0, 0), (0, Cop - C_out), (0, Cip - C_in)))
    b_pad = jnp.pad(b.astype(jnp.float32), (0, Cop - C_out)).reshape(Cop, 1)

    kernel = functools.partial(_conv2d_kernel, kh=KH, kw=KW, dh=dh, dw=dw,
                               wp=Wp, tm=tm, tmh=tmh)

    out = pl.pallas_call(
        kernel,
        out_shape=jax.ShapeDtypeStruct((N, Cop, m_pad), out_dtype),
        grid=(N, nt),
        in_specs=[
            pl.BlockSpec((n_taps, Cop, Cip), lambda n, t: (0, 0, 0)),  # resident weights
            pl.BlockSpec((Cop, 1), lambda n, t: (0, 0)),               # resident bias
            pl.BlockSpec(memory_space=pl.ANY),                         # x stays in HBM
        ],
        out_specs=pl.BlockSpec((1, Cop, tm), lambda n, t: (n, 0, t)),
        scratch_shapes=[
            pltpu.VMEM((2, Cip, tmh), jnp.bfloat16),   # double-buffered x tile
            pltpu.VMEM((Cop, tm), jnp.float32),        # f32 accumulator
            pltpu.SemaphoreType.DMA((2,)),
        ],
        # The tile axis must stay 'arbitrary': the manual prefetch primes at
        # t == 0, so it must not be split across cores.  Batch axis -> megacore.
        compiler_params=pltpu.CompilerParams(
            dimension_semantics=("parallel", "arbitrary")),
    )(w_taps, b_pad, x_flat)

    # drop junk columns / channel padding; result is already NCHW (no transpose).
    out = out[:, :C_out, :m_out].reshape(N, C_out, OH, Wp)[:, :, :, :OW]
    return out


# ---------------------------------------------------------------------------
# reference + parameter init
# ---------------------------------------------------------------------------
def conv2d_reference(x, w, b, *, padding="same", stride=(1, 1), dilation=(1, 1)):
    """Pure-JAX reference with the same bf16 input quantization as the kernel."""
    xp = _apply_module_padding(x.astype(jnp.bfloat16), w.shape[2:], dilation, padding)
    out = lax.conv_general_dilated(
        xp, w.astype(jnp.bfloat16),
        window_strides=stride, padding="VALID", rhs_dilation=dilation,
        dimension_numbers=("NCHW", "OIHW", "NCHW"),
        preferred_element_type=jnp.float32)
    return out + b.astype(jnp.float32)[None, :, None, None]


def init_params(key, in_channels, out_channels, kernel_size):
    """Mirror of the module's init: xavier_uniform_ weight, default conv bias."""
    kh, kw = kernel_size
    k_w, k_b = jax.random.split(key)
    fan_in = in_channels * kh * kw
    fan_out = out_channels * kh * kw
    bound = math.sqrt(6.0 / (fan_in + fan_out))
    w = jax.random.uniform(k_w, (out_channels, in_channels, kh, kw),
                           minval=-bound, maxval=bound, dtype=jnp.float32)
    bb = 1.0 / math.sqrt(fan_in)
    b = jax.random.uniform(k_b, (out_channels,), minval=-bb, maxval=bb,
                           dtype=jnp.float32)
    return w, b


if __name__ == "__main__":
    key = jax.random.PRNGKey(0)
    k_x, k_p = jax.random.split(key)

    N, C_in, H, W = 2, 4, 16, 16
    C_out, KH, KW = 8, 3, 3

    x = jax.random.normal(k_x, (N, C_in, H, W), dtype=jnp.float32)
    w, b = init_params(k_p, C_in, C_out, (KH, KW))

    for pad_mode in ("same", "VALID"):       # zero 'same' and reflect 'VALID' paths
        y = conv2d_forward(x, w, b, padding=pad_mode)
        jax.block_until_ready(y)
        y_ref = conv2d_reference(x, w, b, padding=pad_mode)
        assert y.shape == (N, C_out, H, W), (pad_mode, y.shape)
        max_err = jnp.max(jnp.abs(y - y_ref))
        assert jnp.allclose(y, y_ref, atol=2e-3, rtol=2e-3), \
            f"{pad_mode}: mismatch vs reference, max err {max_err}"

    print("KERNEL_OK")
</pallas_src>

<mosaic_0001>
module attributes {stable_mosaic.version = 11 : i64} {
  func.func @_conv2d_kernel(%arg0: i32, %arg1: i32, %arg2: memref<9x8x8xbf16, #tpu.memory_space<vmem>>, %arg3: memref<8x1xf32, #tpu.memory_space<vmem>>, %arg4: memref<2x8x512xbf16, #tpu.memory_space<any>>, %arg5: memref<1x8x384xf32, #tpu.memory_space<vmem>>, %arg6: memref<2x8x512xbf16, #tpu.memory_space<vmem>>, %arg7: memref<8x384xf32, #tpu.memory_space<vmem>>, %arg8: memref<2x!tpu.dma_semaphore, #tpu.memory_space<semaphore_mem>>) attributes {dimension_semantics = [#tpu.dimension_semantics<parallel>, #tpu.dimension_semantics<arbitrary>], iteration_bounds = array<i64: 2, 1>, scalar_prefetch = 0 : i64, scratch_operands = 3 : i64, tpu.core_type = #tpu.core_type<tc>, window_params = [{pipeline_mode = #tpu.pipeline_mode<synchronous>, transform_indices = @transform_0, window_bounds = array<i64: 9, 8, 8>}, {pipeline_mode = #tpu.pipeline_mode<synchronous>, transform_indices = @transform_1, window_bounds = array<i64: 8, 1>}, {}, {transform_indices = @transform_3, window_bounds = array<i64: 1, 8, 384>}]} {
    %c2_i32 = arith.constant 2 : i32
    %c0_i32 = arith.constant 0 : i32
    %0 = arith.cmpi eq, %c2_i32, %c0_i32 : i32
    %c1_i32 = arith.constant 1 : i32
    %1 = arith.select %0, %c1_i32, %c2_i32 : i32
    %2 = arith.remsi %arg1, %1 : i32
    %c0_i32_0 = arith.constant 0 : i32
    %3 = arith.cmpi ne, %2, %c0_i32_0 : i32
    %c0_i32_1 = arith.constant 0 : i32
    %4 = arith.cmpi slt, %2, %c0_i32_1 : i32
    %c0_i32_2 = arith.constant 0 : i32
    %5 = arith.cmpi slt, %1, %c0_i32_2 : i32
    %6 = arith.xori %4, %5 : i1
    %7 = arith.andi %6, %3 : i1
    %8 = arith.addi %2, %1 : i32
    %9 = arith.select %7, %8, %2 : i32
    %c0_i32_3 = arith.constant 0 : i32
    %10 = arith.cmpi eq, %arg1, %c0_i32_3 : i32
    %11 = arith.extui %10 : i1 to i32
    %c0_i32_4 = arith.constant 0 : i32
    %12 = arith.cmpi ne, %11, %c0_i32_4 : i32
    scf.if %12 {
      %c0_i32_109 = arith.constant 0 : i32
      %c0_i32_110 = arith.constant 0 : i32
      %c0_i32_111 = arith.constant 0 : i32
      %c0_i32_112 = arith.constant 0 : i32
      %108 = tpu.memref_slice %arg4[%arg0, %c0_i32_111, %c0_i32_112] : memref<2x8x512xbf16, #tpu.memory_space<any>> -> memref<1x8x512xbf16, #tpu.memory_space<any>>
      %109 = tpu.memref_squeeze %108 : memref<1x8x512xbf16, #tpu.memory_space<any>> -> memref<8x512xbf16, #tpu.memory_space<any>>
      %c0_i32_113 = arith.constant 0 : i32
      %c0_i32_114 = arith.constant 0 : i32
      %110 = tpu.memref_slice %arg6[%c0_i32_109, %c0_i32_113, %c0_i32_114] : memref<2x8x512xbf16, #tpu.memory_space<vmem>> -> memref<1x8x512xbf16, #tpu.memory_space<vmem>>
      %111 = tpu.memref_squeeze %110 : memref<1x8x512xbf16, #tpu.memory_space<vmem>> -> memref<8x512xbf16, #tpu.memory_space<vmem>>
      %112 = tpu.memref_slice %arg8[%c0_i32_110] : memref<2x!tpu.dma_semaphore, #tpu.memory_space<semaphore_mem>> -> memref<1x!tpu.dma_semaphore, #tpu.memory_space<semaphore_mem>>
      %113 = tpu.memref_squeeze %112 : memref<1x!tpu.dma_semaphore, #tpu.memory_space<semaphore_mem>> -> memref<!tpu.dma_semaphore, #tpu.memory_space<semaphore_mem>>
      tpu.enqueue_dma source(%109 : memref<8x512xbf16, #tpu.memory_space<any>>) target(%111 : memref<8x512xbf16, #tpu.memory_space<vmem>>) target_semaphore(%113 : memref<!tpu.dma_semaphore, #tpu.memory_space<semaphore_mem>>)
    } else {
    }
    %c1_i32_5 = arith.constant 1 : i32
    %13 = arith.addi %arg1, %c1_i32_5 : i32
    %c1_i32_6 = arith.constant 1 : i32
    %14 = arith.cmpi slt, %13, %c1_i32_6 : i32
    %15 = arith.extui %14 : i1 to i32
    %c0_i32_7 = arith.constant 0 : i32
    %16 = arith.cmpi ne, %15, %c0_i32_7 : i32
    scf.if %16 {
      %c1_i32_109 = arith.constant 1 : i32
      %108 = arith.addi %arg1, %c1_i32_109 : i32
      %c1_i32_110 = arith.constant 1 : i32
      %109 = arith.subi %c1_i32_110, %9 : i32
      %c384_i32 = arith.constant 384 : i32
      %110 = arith.muli %108, %c384_i32 : i32
      %c0_i32_111 = arith.constant 0 : i32
      %111 = tpu.memref_slice %arg4[%arg0, %c0_i32_111, %110] : memref<2x8x512xbf16, #tpu.memory_space<any>> -> memref<1x8x512xbf16, #tpu.memory_space<any>>
      %112 = tpu.memref_squeeze %111 : memref<1x8x512xbf16, #tpu.memory_space<any>> -> memref<8x512xbf16, #tpu.memory_space<any>>
      %c0_i32_112 = arith.constant 0 : i32
      %c0_i32_113 = arith.constant 0 : i32
      %113 = tpu.memref_slice %arg6[%109, %c0_i32_112, %c0_i32_113] : memref<2x8x512xbf16, #tpu.memory_space<vmem>> -> memref<1x8x512xbf16, #tpu.memory_space<vmem>>
      %114 = tpu.memref_squeeze %113 : memref<1x8x512xbf16, #tpu.memory_space<vmem>> -> memref<8x512xbf16, #tpu.memory_space<vmem>>
      %115 = tpu.memref_slice %arg8[%109] : memref<2x!tpu.dma_semaphore, #tpu.memory_space<semaphore_mem>> -> memref<1x!tpu.dma_semaphore, #tpu.memory_space<semaphore_mem>>
      %116 = tpu.memref_squeeze %115 : memref<1x!tpu.dma_semaphore, #tpu.memory_space<semaphore_mem>> -> memref<!tpu.dma_semaphore, #tpu.memory_space<semaphore_mem>>
      tpu.enqueue_dma source(%112 : memref<8x512xbf16, #tpu.memory_space<any>>) target(%114 : memref<8x512xbf16, #tpu.memory_space<vmem>>) target_semaphore(%116 : memref<!tpu.dma_semaphore, #tpu.memory_space<semaphore_mem>>)
    } else {
    }
    %c0_i32_8 = arith.constant 0 : i32
    %c0_i32_9 = arith.constant 0 : i32
    %17 = tpu.memref_slice %arg4[%arg0, %c0_i32_8, %c0_i32_9] : memref<2x8x512xbf16, #tpu.memory_space<any>> -> memref<1x8x512xbf16, #tpu.memory_space<any>>
    %18 = tpu.memref_squeeze %17 : memref<1x8x512xbf16, #tpu.memory_space<any>> -> memref<8x512xbf16, #tpu.memory_space<any>>
    %c0_i32_10 = arith.constant 0 : i32
    %c0_i32_11 = arith.constant 0 : i32
    %19 = tpu.memref_slice %arg6[%9, %c0_i32_10, %c0_i32_11] : memref<2x8x512xbf16, #tpu.memory_space<vmem>> -> memref<1x8x512xbf16, #tpu.memory_space<vmem>>
    %20 = tpu.memref_squeeze %19 : memref<1x8x512xbf16, #tpu.memory_space<vmem>> -> memref<8x512xbf16, #tpu.memory_space<vmem>>
    %21 = tpu.memref_slice %arg8[%9] : memref<2x!tpu.dma_semaphore, #tpu.memory_space<semaphore_mem>> -> memref<1x!tpu.dma_semaphore, #tpu.memory_space<semaphore_mem>>
    %22 = tpu.memref_squeeze %21 : memref<1x!tpu.dma_semaphore, #tpu.memory_space<semaphore_mem>> -> memref<!tpu.dma_semaphore, #tpu.memory_space<semaphore_mem>>
    tpu.wait_dma2 semaphore(%22 : memref<!tpu.dma_semaphore, #tpu.memory_space<semaphore_mem>>) src(%18 : memref<8x512xbf16, #tpu.memory_space<any>>) dst(%20 : memref<8x512xbf16, #tpu.memory_space<vmem>>)
    %c0 = arith.constant 0 : index
    %c0_12 = arith.constant 0 : index
    %c0_13 = arith.constant 0 : index
    %23 = vector.load %arg2[%c0, %c0_12, %c0_13] : memref<9x8x8xbf16, #tpu.memory_space<vmem>>, vector<1x8x8xbf16>
    %24 = vector.shape_cast %23 : vector<1x8x8xbf16> to vector<8x8xbf16>
    %c0_i32_14 = arith.constant 0 : i32
    %c0_i32_15 = arith.constant 0 : i32
    %25 = tpu.memref_slice %arg6[%9, %c0_i32_14, %c0_i32_15] : memref<2x8x512xbf16, #tpu.memory_space<vmem>> -> memref<1x8x512xbf16, #tpu.memory_space<vmem>>
    %26 = tpu.memref_squeeze %25 : memref<1x8x512xbf16, #tpu.memory_space<vmem>> -> memref<8x512xbf16, #tpu.memory_space<vmem>>
    %c0_16 = arith.constant 0 : index
    %c0_17 = arith.constant 0 : index
    %27 = vector.load %26[%c0_16, %c0_17] : memref<8x512xbf16, #tpu.memory_space<vmem>>, vector<8x384xbf16>
    %cst = arith.constant dense<0.000000e+00> : vector<8x384xf32>
    %28 = tpu.matmul %24, %27, %cst {dimension_numbers = #tpu.dot_dimension_numbers<[1], [0], [0], [1], [0, 0, 1, 1], [], []>} : vector<8x8xbf16>, vector<8x384xbf16>, vector<8x384xf32> -> vector<8x384xf32>
    %c0_18 = arith.constant 0 : index
    %c0_19 = arith.constant 0 : index
    %29 = vector.load %arg7[%c0_18, %c0_19] : memref<8x384xf32, #tpu.memory_space<vmem>>, vector<8x384xf32>
    tpu.vector_store %arg7[%c0_18, %c0_19], %28 {strides = array<i32>} : memref<8x384xf32, #tpu.memory_space<vmem>>, vector<8x384xf32>,
    %c1 = arith.constant 1 : index
    %c0_20 = arith.constant 0 : index
    %c0_21 = arith.constant 0 : index
    %30 = vector.load %arg2[%c1, %c0_20, %c0_21] : memref<9x8x8xbf16, #tpu.memory_space<vmem>>, vector<1x8x8xbf16>
    %31 = vector.shape_cast %30 : vector<1x8x8xbf16> to vector<8x8xbf16>
    %c0_i32_22 = arith.constant 0 : i32
    %c0_i32_23 = arith.constant 0 : i32
    %32 = tpu.memref_slice %arg6[%9, %c0_i32_22, %c0_i32_23] : memref<2x8x512xbf16, #tpu.memory_space<vmem>> -> memref<1x8x512xbf16, #tpu.memory_space<vmem>>
    %33 = tpu.memref_squeeze %32 : memref<1x8x512xbf16, #tpu.memory_space<vmem>> -> memref<8x512xbf16, #tpu.memory_space<vmem>>
    %c0_24 = arith.constant 0 : index
    %c1_25 = arith.constant 1 : index
    %34 = vector.load %33[%c0_24, %c1_25] : memref<8x512xbf16, #tpu.memory_space<vmem>>, vector<8x384xbf16>
    %cst_26 = arith.constant dense<0.000000e+00> : vector<8x384xf32>
    %35 = tpu.matmul %31, %34, %cst_26 {dimension_numbers = #tpu.dot_dimension_numbers<[1], [0], [0], [1], [0, 0, 1, 1], [], []>} : vector<8x8xbf16>, vector<8x384xbf16>, vector<8x384xf32> -> vector<8x384xf32>
    %c0_27 = arith.constant 0 : index
    %c0_28 = arith.constant 0 : index
    %36 = vector.load %arg7[%c0_27, %c0_28] : memref<8x384xf32, #tpu.memory_space<vmem>>, vector<8x384xf32>
    %37 = arith.addf %36, %35 : vector<8x384xf32>
    %c0_29 = arith.constant 0 : index
    %c0_30 = arith.constant 0 : index
    %38 = vector.load %arg7[%c0_29, %c0_30] : memref<8x384xf32, #tpu.memory_space<vmem>>, vector<8x384xf32>
    tpu.vector_store %arg7[%c0_29, %c0_30], %37 {strides = array<i32>} : memref<8x384xf32, #tpu.memory_space<vmem>>, vector<8x384xf32>,
    %c2 = arith.constant 2 : index
    %c0_31 = arith.constant 0 : index
    %c0_32 = arith.constant 0 : index
    %39 = vector.load %arg2[%c2, %c0_31, %c0_32] : memref<9x8x8xbf16, #tpu.memory_space<vmem>>, vector<1x8x8xbf16>
    %40 = vector.shape_cast %39 : vector<1x8x8xbf16> to vector<8x8xbf16>
    %c0_i32_33 = arith.constant 0 : i32
    %c0_i32_34 = arith.constant 0 : i32
    %41 = tpu.memref_slice %arg6[%9, %c0_i32_33, %c0_i32_34] : memref<2x8x512xbf16, #tpu.memory_space<vmem>> -> memref<1x8x512xbf16, #tpu.memory_space<vmem>>
    %42 = tpu.memref_squeeze %41 : memref<1x8x512xbf16, #tpu.memory_space<vmem>> -> memref<8x512xbf16, #tpu.memory_space<vmem>>
    %c0_35 = arith.constant 0 : index
    %c2_36 = arith.constant 2 : index
    %43 = vector.load %42[%c0_35, %c2_36] : memref<8x512xbf16, #tpu.memory_space<vmem>>, vector<8x384xbf16>
    %cst_37 = arith.constant dense<0.000000e+00> : vector<8x384xf32>
    %44 = tpu.matmul %40, %43, %cst_37 {dimension_numbers = #tpu.dot_dimension_numbers<[1], [0], [0], [1], [0, 0, 1, 1], [], []>} : vector<8x8xbf16>, vector<8x384xbf16>, vector<8x384xf32> -> vector<8x384xf32>
    %c0_38 = arith.constant 0 : index
    %c0_39 = arith.constant 0 : index
    %45 = vector.load %arg7[%c0_38, %c0_39] : memref<8x384xf32, #tpu.memory_space<vmem>>, vector<8x384xf32>
    %46 = arith.addf %45, %44 : vector<8x384xf32>
    %c0_40 = arith.constant 0 : index
    %c0_41 = arith.constant 0 : index
    %47 = vector.load %arg7[%c0_40, %c0_41] : memref<8x384xf32, #tpu.memory_space<vmem>>, vector<8x384xf32>
    tpu.vector_store %arg7[%c0_40, %c0_41], %46 {strides = array<i32>} : memref<8x384xf32, #tpu.memory_space<vmem>>, vector<8x384xf32>,
    %c3 = arith.constant 3 : index
    %c0_42 = arith.constant 0 : index
    %c0_43 = arith.constant 0 : index
    %48 = vector.load %arg2[%c3, %c0_42, %c0_43] : memref<9x8x8xbf16, #tpu.memory_space<vmem>>, vector<1x8x8xbf16>
    %49 = vector.shape_cast %48 : vector<1x8x8xbf16> to vector<8x8xbf16>
    %c0_i32_44 = arith.constant 0 : i32
    %c0_i32_45 = arith.constant 0 : i32
    %50 = tpu.memref_slice %arg6[%9, %c0_i32_44, %c0_i32_45] : memref<2x8x512xbf16, #tpu.memory_space<vmem>> -> memref<1x8x512xbf16, #tpu.memory_space<vmem>>
    %51 = tpu.memref_squeeze %50 : memref<1x8x512xbf16, #tpu.memory_space<vmem>> -> memref<8x512xbf16, #tpu.memory_space<vmem>>
    %c0_46 = arith.constant 0 : index
    %c18 = arith.constant 18 : index
    %52 = vector.load %51[%c0_46, %c18] : memref<8x512xbf16, #tpu.memory_space<vmem>>, vector<8x384xbf16>
    %cst_47 = arith.constant dense<0.000000e+00> : vector<8x384xf32>
    %53 = tpu.matmul %49, %52, %cst_47 {dimension_numbers = #tpu.dot_dimension_numbers<[1], [0], [0], [1], [0, 0, 1, 1], [], []>} : vector<8x8xbf16>, vector<8x384xbf16>, vector<8x384xf32> -> vector<8x384xf32>
    %c0_48 = arith.constant 0 : index
    %c0_49 = arith.constant 0 : index
    %54 = vector.load %arg7[%c0_48, %c0_49] : memref<8x384xf32, #tpu.memory_space<vmem>>, vector<8x384xf32>
    %55 = arith.addf %54, %53 : vector<8x384xf32>
    %c0_50 = arith.constant 0 : index
    %c0_51 = arith.constant 0 : index
    %56 = vector.load %arg7[%c0_50, %c0_51] : memref<8x384xf32, #tpu.memory_space<vmem>>, vector<8x384xf32>
    tpu.vector_store %arg7[%c0_50, %c0_51], %55 {strides = array<i32>} : memref<8x384xf32, #tpu.memory_space<vmem>>, vector<8x384xf32>,
    %c4 = arith.constant 4 : index
    %c0_52 = arith.constant 0 : index
    %c0_53 = arith.constant 0 : index
    %57 = vector.load %arg2[%c4, %c0_52, %c0_53] : memref<9x8x8xbf16, #tpu.memory_space<vmem>>, vector<1x8x8xbf16>
    %58 = vector.shape_cast %57 : vector<1x8x8xbf16> to vector<8x8xbf16>
    %c0_i32_54 = arith.constant 0 : i32
    %c0_i32_55 = arith.constant 0 : i32
    %59 = tpu.memref_slice %arg6[%9, %c0_i32_54, %c0_i32_55] : memref<2x8x512xbf16, #tpu.memory_space<vmem>> -> memref<1x8x512xbf16, #tpu.memory_space<vmem>>
    %60 = tpu.memref_squeeze %59 : memref<1x8x512xbf16, #tpu.memory_space<vmem>> -> memref<8x512xbf16, #tpu.memory_space<vmem>>
    %c0_56 = arith.constant 0 : index
    %c19 = arith.constant 19 : index
    %61 = vector.load %60[%c0_56, %c19] : memref<8x512xbf16, #tpu.memory_space<vmem>>, vector<8x384xbf16>
    %cst_57 = arith.constant dense<0.000000e+00> : vector<8x384xf32>
    %62 = tpu.matmul %58, %61, %cst_57 {dimension_numbers = #tpu.dot_dimension_numbers<[1], [0], [0], [1], [0, 0, 1, 1], [], []>} : vector<8x8xbf16>, vector<8x384xbf16>, vector<8x384xf32> -> vector<8x384xf32>
    %c0_58 = arith.constant 0 : index
    %c0_59 = arith.constant 0 : index
    %63 = vector.load %arg7[%c0_58, %c0_59] : memref<8x384xf32, #tpu.memory_space<vmem>>, vector<8x384xf32>
    %64 = arith.addf %63, %62 : vector<8x384xf32>
    %c0_60 = arith.constant 0 : index
    %c0_61 = arith.constant 0 : index
    %65 = vector.load %arg7[%c0_60, %c0_61] : memref<8x384xf32, #tpu.memory_space<vmem>>, vector<8x384xf32>
    tpu.vector_store %arg7[%c0_60, %c0_61], %64 {strides = array<i32>} : memref<8x384xf32, #tpu.memory_space<vmem>>, vector<8x384xf32>,
    %c5 = arith.constant 5 : index
    %c0_62 = arith.constant 0 : index
    %c0_63 = arith.constant 0 : index
    %66 = vector.load %arg2[%c5, %c0_62, %c0_63] : memref<9x8x8xbf16, #tpu.memory_space<vmem>>, vector<1x8x8xbf16>
    %67 = vector.shape_cast %66 : vector<1x8x8xbf16> to vector<8x8xbf16>
    %c0_i32_64 = arith.constant 0 : i32
    %c0_i32_65 = arith.constant 0 : i32
    %68 = tpu.memref_slice %arg6[%9, %c0_i32_64, %c0_i32_65] : memref<2x8x512xbf16, #tpu.memory_space<vmem>> -> memref<1x8x512xbf16, #tpu.memory_space<vmem>>
    %69 = tpu.memref_squeeze %68 : memref<1x8x512xbf16, #tpu.memory_space<vmem>> -> memref<8x512xbf16, #tpu.memory_space<vmem>>
    %c0_66 = arith.constant 0 : index
    %c20 = arith.constant 20 : index
    %70 = vector.load %69[%c0_66, %c20] : memref<8x512xbf16, #tpu.memory_space<vmem>>, vector<8x384xbf16>
    %cst_67 = arith.constant dense<0.000000e+00> : vector<8x384xf32>
    %71 = tpu.matmul %67, %70, %cst_67 {dimension_numbers = #tpu.dot_dimension_numbers<[1], [0], [0], [1], [0, 0, 1, 1], [], []>} : vector<8x8xbf16>, vector<8x384xbf16>, vector<8x384xf32> -> vector<8x384xf32>
    %c0_68 = arith.constant 0 : index
    %c0_69 = arith.constant 0 : index
    %72 = vector.load %arg7[%c0_68, %c0_69] : memref<8x384xf32, #tpu.memory_space<vmem>>, vector<8x384xf32>
    %73 = arith.addf %72, %71 : vector<8x384xf32>
    %c0_70 = arith.constant 0 : index
    %c0_71 = arith.constant 0 : index
    %74 = vector.load %arg7[%c0_70, %c0_71] : memref<8x384xf32, #tpu.memory_space<vmem>>, vector<8x384xf32>
    tpu.vector_store %arg7[%c0_70, %c0_71], %73 {strides = array<i32>} : memref<8x384xf32, #tpu.memory_space<vmem>>, vector<8x384xf32>,
    %c6 = arith.constant 6 : index
    %c0_72 = arith.constant 0 : index
    %c0_73 = arith.constant 0 : index
    %75 = vector.load %arg2[%c6, %c0_72, %c0_73] : memref<9x8x8xbf16, #tpu.memory_space<vmem>>, vector<1x8x8xbf16>
    %76 = vector.shape_cast %75 : vector<1x8x8xbf16> to vector<8x8xbf16>
    %c0_i32_74 = arith.constant 0 : i32
    %c0_i32_75 = arith.constant 0 : i32
    %77 = tpu.memref_slice %arg6[%9, %c0_i32_74, %c0_i32_75] : memref<2x8x512xbf16, #tpu.memory_space<vmem>> -> memref<1x8x512xbf16, #tpu.memory_space<vmem>>
    %78 = tpu.memref_squeeze %77 : memref<1x8x512xbf16, #tpu.memory_space<vmem>> -> memref<8x512xbf16, #tpu.memory_space<vmem>>
    %c0_76 = arith.constant 0 : index
    %c36 = arith.constant 36 : index
    %79 = vector.load %78[%c0_76, %c36] : memref<8x512xbf16, #tpu.memory_space<vmem>>, vector<8x384xbf16>
    %cst_77 = arith.constant dense<0.000000e+00> : vector<8x384xf32>
    %80 = tpu.matmul %76, %79, %cst_77 {dimension_numbers = #tpu.dot_dimension_numbers<[1], [0], [0], [1], [0, 0, 1, 1], [], []>} : vector<8x8xbf16>, vector<8x384xbf16>, vector<8x384xf32> -> vector<8x384xf32>
    %c0_78 = arith.constant 0 : index
    %c0_79 = arith.constant 0 : index
    %81 = vector.load %arg7[%c0_78, %c0_79] : memref<8x384xf32, #tpu.memory_space<vmem>>, vector<8x384xf32>
    %82 = arith.addf %81, %80 : vector<8x384xf32>
    %c0_80 = arith.constant 0 : index
    %c0_81 = arith.constant 0 : index
    %83 = vector.load %arg7[%c0_80, %c0_81] : memref<8x384xf32, #tpu.memory_space<vmem>>, vector<8x384xf32>
    tpu.vector_store %arg7[%c0_80, %c0_81], %82 {strides = array<i32>} : memref<8x384xf32, #tpu.memory_space<vmem>>, vector<8x384xf32>,
    %c7 = arith.constant 7 : index
    %c0_82 = arith.constant 0 : index
    %c0_83 = arith.constant 0 : index
    %84 = vector.load %arg2[%c7, %c0_82, %c0_83] : memref<9x8x8xbf16, #tpu.memory_space<vmem>>, vector<1x8x8xbf16>
    %85 = vector.shape_cast %84 : vector<1x8x8xbf16> to vector<8x8xbf16>
    %c0_i32_84 = arith.constant 0 : i32
    %c0_i32_85 = arith.constant 0 : i32
    %86 = tpu.memref_slice %arg6[%9, %c0_i32_84, %c0_i32_85] : memref<2x8x512xbf16, #tpu.memory_space<vmem>> -> memref<1x8x512xbf16, #tpu.memory_space<vmem>>
    %87 = tpu.memref_squeeze %86 : memref<1x8x512xbf16, #tpu.memory_space<vmem>> -> memref<8x512xbf16, #tpu.memory_space<vmem>>
    %c0_86 = arith.constant 0 : index
    %c37 = arith.constant 37 : index
    %88 = vector.load %87[%c0_86, %c37] : memref<8x512xbf16, #tpu.memory_space<vmem>>, vector<8x384xbf16>
    %cst_87 = arith.constant dense<0.000000e+00> : vector<8x384xf32>
    %89 = tpu.matmul %85, %88, %cst_87 {dimension_numbers = #tpu.dot_dimension_numbers<[1], [0], [0], [1], [0, 0, 1, 1], [], []>} : vector<8x8xbf16>, vector<8x384xbf16>, vector<8x384xf32> -> vector<8x384xf32>
    %c0_88 = arith.constant 0 : index
    %c0_89 = arith.constant 0 : index
    %90 = vector.load %arg7[%c0_88, %c0_89] : memref<8x384xf32, #tpu.memory_space<vmem>>, vector<8x384xf32>
    %91 = arith.addf %90, %89 : vector<8x384xf32>
    %c0_90 = arith.constant 0 : index
    %c0_91 = arith.constant 0 : index
    %92 = vector.load %arg7[%c0_90, %c0_91] : memref<8x384xf32, #tpu.memory_space<vmem>>, vector<8x384xf32>
    tpu.vector_store %arg7[%c0_90, %c0_91], %91 {strides = array<i32>} : memref<8x384xf32, #tpu.memory_space<vmem>>, vector<8x384xf32>,
    %c8 = arith.constant 8 : index
    %c0_92 = arith.constant 0 : index
    %c0_93 = arith.constant 0 : index
    %93 = vector.load %arg2[%c8, %c0_92, %c0_93] : memref<9x8x8xbf16, #tpu.memory_space<vmem>>, vector<1x8x8xbf16>
    %94 = vector.shape_cast %93 : vector<1x8x8xbf16> to vector<8x8xbf16>
    %c0_i32_94 = arith.constant 0 : i32
    %c0_i32_95 = arith.constant 0 : i32
    %95 = tpu.memref_slice %arg6[%9, %c0_i32_94, %c0_i32_95] : memref<2x8x512xbf16, #tpu.memory_space<vmem>> -> memref<1x8x512xbf16, #tpu.memory_space<vmem>>
    %96 = tpu.memref_squeeze %95 : memref<1x8x512xbf16, #tpu.memory_space<vmem>> -> memref<8x512xbf16, #tpu.memory_space<vmem>>
    %c0_96 = arith.constant 0 : index
    %c38 = arith.constant 38 : index
    %97 = vector.load %96[%c0_96, %c38] : memref<8x512xbf16, #tpu.memory_space<vmem>>, vector<8x384xbf16>
    %cst_97 = arith.constant dense<0.000000e+00> : vector<8x384xf32>
    %98 = tpu.matmul %94, %97, %cst_97 {dimension_numbers = #tpu.dot_dimension_numbers<[1], [0], [0], [1], [0, 0, 1, 1], [], []>} : vector<8x8xbf16>, vector<8x384xbf16>, vector<8x384xf32> -> vector<8x384xf32>
    %c0_98 = arith.constant 0 : index
    %c0_99 = arith.constant 0 : index
    %99 = vector.load %arg7[%c0_98, %c0_99] : memref<8x384xf32, #tpu.memory_space<vmem>>, vector<8x384xf32>
    %100 = arith.addf %99, %98 : vector<8x384xf32>
    %c0_100 = arith.constant 0 : index
    %c0_101 = arith.constant 0 : index
    %101 = vector.load %arg7[%c0_100, %c0_101] : memref<8x384xf32, #tpu.memory_space<vmem>>, vector<8x384xf32>
    tpu.vector_store %arg7[%c0_100, %c0_101], %100 {strides = array<i32>} : memref<8x384xf32, #tpu.memory_space<vmem>>, vector<8x384xf32>,
    %c0_102 = arith.constant 0 : index
    %c0_103 = arith.constant 0 : index
    %102 = vector.load %arg7[%c0_102, %c0_103] : memref<8x384xf32, #tpu.memory_space<vmem>>, vector<8x384xf32>
    %c0_104 = arith.constant 0 : index
    %c0_105 = arith.constant 0 : index
    %103 = vector.load %arg3[%c0_104, %c0_105] : memref<8x1xf32, #tpu.memory_space<vmem>>, vector<8x1xf32>
    %104 = vector.broadcast %103 : vector<8x1xf32> to vector<8x384xf32>
    %105 = arith.addf %102, %104 : vector<8x384xf32>
    %106 = vector.shape_cast %105 : vector<8x384xf32> to vector<1x8x384xf32>
    %c0_106 = arith.constant 0 : index
    %c0_107 = arith.constant 0 : index
    %c0_108 = arith.constant 0 : index
    %107 = vector.load %arg5[%c0_106, %c0_107, %c0_108] : memref<1x8x384xf32, #tpu.memory_space<vmem>>, vector<1x8x384xf32>
    tpu.vector_store %arg5[%c0_106, %c0_107, %c0_108], %106 {strides = array<i32>} : memref<1x8x384xf32, #tpu.memory_space<vmem>>, vector<1x8x384xf32>,
    return
  }
  func.func @transform_0(%arg0: i32, %arg1: i32) -> (i32, i32, i32) {
    %c0_i32 = arith.constant 0 : i32
    %c0_i32_0 = arith.constant 0 : i32
    %c0_i32_1 = arith.constant 0 : i32
    %c0_i32_2 = arith.constant 0 : i32
    return %c0_i32, %c0_i32_0, %c0_i32_1 : i32, i32, i32
  }
  func.func @transform_1(%arg0: i32, %arg1: i32) -> (i32, i32) {
    %c0_i32 = arith.constant 0 : i32
    %c0_i32_0 = arith.constant 0 : i32
    %c0_i32_1 = arith.constant 0 : i32
    return %c0_i32, %c0_i32_0 : i32, i32
  }
  func.func @transform_3(%arg0: i32, %arg1: i32) -> (i32, i32, i32) {
    %c0_i32 = arith.constant 0 : i32
    %c0_i32_0 = arith.constant 0 : i32
    return %arg0, %c0_i32, %arg1 : i32, i32, i32
  }
}

</mosaic_0001>

<bundles_post_ra>
// kernel: tpu_custom_call.1
= control target key start
LH: loop header
LB: loop body
LE: loop exit
PB: predicated region body
PF: predicated region fallthrough
CT: control target
= control target key end

     0   :  { %8 = vsyncpa [#allocation6], 0  ;;  %s1546_s0 = inlined_call_operand.vmem [shape: bf16[9,8,8], index: 0, kind: input, shape index: {}]   ;;  %s1547_s1 = inlined_call_operand.vmem [shape: f32[8,1], index: 1, kind: input, shape index: {}]   ;;  %s1548_s2 = inlined_call_operand.vmem [shape: bf16[2,8,512], index: 2, kind: input, shape index: {}]   ;;  %s1549_s3 = inlined_call_operand.hbm [shape: f32[2,8,384], index: 3, kind: output, shape index: {}]  }
   0x1   :  { %10 = vsyncpa [#allocation6 + $0x1], 0  ;;  %s1335_s12 = smov 0   ;;  %s1337_s13 = smov 0  }
   0x2   :  { %s1339_s14 = smov 0   ;;  %s1341_s15 = smov 0  }
   0x3   :  { %s1343_s16 = smov 0   ;;  %s1345_s17 = smov 0  }
   0x4 LB: > { %s1103_s18 = sadd.s32 4294967295, %s1304_s17   ;;  %s1104_s19 = sadd.s32 4294967294, %s1304_s17   ;;  %s1304_s17 = sphi %s1345_s17, %s16_s17   ;;  %s1300_s16 = sphi %s1343_s16, %s1556_s16   ;;  %s1296_s15 = sphi %s1341_s15, %s1555_s15   ;;  %s1292_s14 = sphi %s1339_s14, %s1554_s14   ;;  %s1288_s13 = sphi %s1337_s13, %s1553_s13   ;;  %s1284_s12 = sphi %s1335_s12, %s1552_s12  }
   0x5   : > { %s28_s20 = sadd.s32 1, %s1300_s16  ;;  %s79_s21 = sadd.s32 1, %s1292_s14 }
   0x6   : > { %p30_p0 = scmp.ge.s32.totalorder %s28_s20, 2  ;;  %p89_p1 = scmp.ne.s32.totalorder %s1292_s14, %s1288_s13 }
   0x7   : > { %p90_p2 = scmp.eq.s32.totalorder %s1103_s18, 1  ;;  %p95_p3 = scmp.ne.s32.totalorder %s1288_s13, %s1284_s12 }
   0x8   : > { %s1558_s20 = smov (%p30_p0, %s28_s20), 0  ;;  %p96_p5 = scmp.eq.s32.totalorder %s1104_s19, 1 }
   0x9   : > { %p1375_p4 = por %p90_p2, %p89_p1  ;;  %s74_s23 = ssub.s32 %s1300_s16, %s1558_s20 }
   0xa   : > { %p1106_p6 = scmp.ge.s32.totalorder %s1304_s17, 1  ;;  %p77_p7 = scmp.eq.s32.totalorder %s74_s23, 0 }
   0xb   : > { %p1382_p8 = por %p96_p5, %p95_p3  ;;  %p120_p9 = scmp.lt.s32.totalorder %s1304_s17, 3 }
   0xc   : > { %s1388_s25 = scalar_select %p77_p7, %s1292_s14, %s79_s21  }
   0xd   : > { %p121_p10 = pnand %p1106_p6, %p120_p9 }
   0xe   : > { %s134_s26 = sand.u32 (!%p121_p10), 1, %s1288_s13   ;;  %s1153_s27 = sshll.u32 (!%p121_p10), %s1296_s15, 4 }
   0xf   : > { %124 = sbr.rel (%p121_p10) target bundleno = 383 (0x17f), region = 28  ;;  %s157_s4 = scalar_lea.vmem (!%p121_p10), %s1548_s2, %s1153_s27 }
  0x10   : > { %s1156_s28 = smul.u32 (!%p121_p10), 24, %s134_s26 }
  0x12   : > { %s1397_s5 = scalar_lea.vmem (!%p121_p10), [#allocation5], %s1156_s28 }
  0x14   : > { %v168_v0 = vld [vmem:[%s157_s4] sm:$0xff]  ;;  %v170_v1 = vld [vmem:[%s157_s4 + $0x8] sm:$0xff] }
  0x15   : > { %169 = vst [vmem:[#allocation2] sm:$0xff] %v168_v0 }
  0x16   : > { %171 = vst [vmem:[#allocation2 + $0x8] sm:$0xff] %v170_v1 }
  0x17   : > { %177 = vsyncadd [#allocation4], 256 }
  0x18   : > { %1276 = dma.done.wait [#allocation4], 256 }
  0x19   : > { %1277 = vsyncadd [#allocation4], 4294967040  ;;  %s1306_s6 = smov 126   ;;  %s1307_s7 = smov 127   ;;  %vm238_vm0 = vcmask 1043456   ;;  %vm234_vm1 = vcmask 64512  }
  0x1a   : > { %s1308_s8 = smov 110   ;;  %s1309_s9 = smov 109   ;;  %v223_v18 = vld [vmem:[%s1546_s0] sm:$0xf]  ;;  %vm312_vm2 = vcmask 1039360   ;;  %vm398_vm3 = vcmask 1031168  }
  0x1b   : > { %s1310_s10 = smov 108   ;;  %s1311_s11 = smov 92   ;;  %v1116_v23 = vld [vmem:[%s1546_s0 + $0x4] sm:$0xf]  ;;  %v1120_v37 = vld [vmem:[%s1546_s0 + $0x8] sm:$0xf] }
  0x1c   : > { %v378_v2 = vld [vmem:[#allocation2] sm:$0xff]  ;;  %s1312_s18 = smov 91   ;;  %s1313_s23 = smov 90   ;;  %vm484_vm4 = vcmask 900096   ;;  %v1124_v53 = vld [vmem:[%s1546_s0 + $0xc] sm:$0xf] }
  0x1d   : > { %v379_v3 = vld [vmem:[#allocation2 + $0x8] sm:$0xff]  ;;  %v382_v4 = vunpack.c.l.b16 %v378_v2  ;;  %v383_v8 = vunpack.c.h.b16 %v378_v2  ;;  %vm570_vm5 = vcmask 891904   ;;  %vm656_vm6 = vcmask 883712   ;;  %s1157_s30 = smul.u32 24, %s1296_s15  ;;  %s1244_s21 = scalar_lea.hbm %s1549_s3, 48 }
  0x1e   : > { %v384_v5 = vunpack.c.l.b16 %v379_v3  ;;  %v299_v9 = vunpack.c.h.b16 %v379_v3  ;;  %v225_v12 = vld [vmem:[#allocation2 + $0x8] sm:$0xf]  ;;  %vm742_vm7 = vcmask 752640   ;;  %vm828_vm8 = vcmask 744448  }
  0x1f   : > { %v386_v6 = vpack.c.b16 %v382_v4, %v382_v4  ;;  %v387_v10 = vpack.c.b16 %v383_v8, %v383_v8  ;;  %v230_v15 = vunpack.c.l.b16 %v225_v12  ;;  %vm914_vm9 = vcmask 736256  }
  0x20   : > { %v388_v7 = vpack.c.b16 %v384_v5, %v384_v5  ;;  %v303_v11 = vpack.c.b16 %v299_v9, %v299_v9 }
  0x21   : > { %390 = vrot.lane.b32.xlu1 %v386_v6, %s1306_s6  ;;  %304 = vrot.lane.b32.xlu0 %v386_v6, %s1307_s7  ;;  %v240_v13 = vsel %vm238_vm0, %v386_v6, 0  ;;  %v243_v14 = vsel %vm238_vm0, %v387_v10, 0  ;;  %v233_v16 = vpack.c.b16 %v230_v15, %v230_v15 }
  0x22   : > { %308 = vrot.lane.b32.xlu2 %v388_v7, %s1307_s7  ;;  %255 = vmatpush.bf16.msra.mxu0 %v240_v13 }
  0x23   : > { %268 = vmatpush.bf16.msra.mxu1 %v243_v14  ;;  %v246_v17 = vsel %vm238_vm0, %v233_v16, 0 }
  0x24   : > { %281 = vmatpush.bf16.msra.mxu2 %v246_v17 }
  0x25   : > { %1113 = vmatmul.msk.bf16.vlgmr.msra.gmra.mxu0 %vm234_vm1, %v223_v18 }
  0x26   : > { %1114 = vmatmul.msk.bf16.vlgmr.msra.gmra.mxu1 %vm234_vm1, %v223_v18 }
  0x27   : > { %1115 = vmatmul.msk.bf16.vlgmr.msra.gmra.mxu2 %vm234_vm1, %v223_v18 }
  0x29   : > { %392 = vrot.lane.b32.xlu1 %v387_v10, %s1306_s6  ;;  %306 = vrot.lane.b32.xlu0 %v387_v10, %s1307_s7 }
  0x2a   : > { %310 = vrot.lane.b32.xlu2 %v303_v11, %s1307_s7  ;;  %s1007_s7 = scalar_lea.hbm %s1549_s3, %s1157_s30 }
  0x2b   : > { %s1011_s15 = sshll.u32 %s1007_s7, 4  ;;  %s1012_s15 = int_to_ptr.hbm [resolvable:$true] %s1011_s15 }
  0x31   : > { %478 = vrot.lane.b32.xlu1 %v387_v10, %s1308_s8  ;;  %394 = vrot.lane.b32.xlu0 %v388_v7, %s1306_s6 }
  0x32   : > { %480 = vrot.lane.b32.xlu2 %v388_v7, %s1308_s8 }
  0x39   : > { %476 = vrot.lane.b32.xlu1 %v386_v6, %s1308_s8  ;;  %396 = vrot.lane.b32.xlu0 %v303_v11, %s1306_s6 }
  0x3a   : > { %482 = vrot.lane.b32.xlu2 %v303_v11, %s1308_s8  ;;  %s1009_s8 = sshll.u32 %s1397_s5, 4  ;;  %s1010_s8 = int_to_ptr.vmem [resolvable:$true] %s1009_s8 }
  0x41   : > { %568 = vrot.lane.b32.xlu1 %v303_v11, %s1309_s9  ;;  %566 = vrot.lane.b32.xlu0 %v388_v7, %s1309_s9 }
  0x42   : > { %562 = vrot.lane.b32.xlu2 %v386_v6, %s1309_s9 }
  0x49   : > { %648 = vrot.lane.b32.xlu1 %v386_v6, %s1310_s10  ;;  %564 = vrot.lane.b32.xlu0 %v387_v10, %s1309_s9  ;;  %s994_s9 = scalar_lea.sflag [#allocation6], %s134_s26 }
  0x4a   : > { %650 = vrot.lane.b32.xlu2 %v387_v10, %s1310_s10 }
  0x51   : > { %736 = vrot.lane.b32.xlu1 %v387_v10, %s1311_s11  ;;  %734 = vrot.lane.b32.xlu0 %v386_v6, %s1311_s11 }
  0x52   : > { %652 = vrot.lane.b32.xlu2 %v388_v7, %s1310_s10 }
  0x59   : > { %738 = vrot.lane.b32.xlu1 %v388_v7, %s1311_s11  ;;  %654 = vrot.lane.b32.xlu0 %v303_v11, %s1310_s10  ;;  %s1238_s10 = sshra.s32 %s1012_s15, 4  ;;  %s1239_s10 = int_to_ptr.hbm [resolvable:$true] %s1238_s10 }
  0x5a   : > { %822 = vrot.lane.b32.xlu2 %v387_v10, %s1312_s18  ;;  %p1245_p0 = scmp.lt.s32.totalorder %s1239_s10, %s1549_s3 }
  0x61   : > { %824 = vrot.lane.b32.xlu0 %v388_v7, %s1312_s18  ;;  %740 = vrot.lane.b32.xlu1 %v303_v11, %s1311_s11  ;;  %s1240_s11 = scalar_lea.hbm %s1239_s10, 24 }
  0x62   : > { %820 = vrot.lane.b32.xlu2 %v386_v6, %s1312_s18  ;;  %p1241_p11 = scmp.ne.s32.totalorder %s1239_s10, %s1240_s11  ;;  %p1246_p1 = scmp.lt.s32.totalorder %s1244_s21, %s1240_s11 }
  0x64   : > { %p1242_p12 = pnand %p1241_p11, %p1375_p4  ;;  %p1247_p2 = por %p1246_p1, %p1245_p0 }
  0x66   : > { %p1243_p13 = pneg %p1242_p12 }
  0x68   : > { %p1248_p3 = pnand %p1247_p2, %p1243_p13 }
  0x69   : > { %826 = vrot.lane.b32.xlu0 %v303_v11, %s1312_s18  ;;  %910 = vrot.lane.b32.xlu1 %v388_v7, %s1313_s23 }
  0x6a   : > { %912 = vrot.lane.b32.xlu2 %v303_v11, %s1313_s23 }
  0x71   : > { %908 = vrot.lane.b32.xlu1 %v387_v10, %s1313_s23  ;;  %906 = vrot.lane.b32.xlu0 %v386_v6, %s1313_s23  ;;  %v1128_v6 = vld [vmem:[%s1546_s0 + $0x10] sm:$0xf] }
  0x7c   : > { %v309_v19 = vpop.permute.xlu2 %308 }
  0x84   : > { %v311_v20 = vpop.permute.xlu2 %310 }
  0x85   : > { %v315_v21 = vsel %vm312_vm2, %v309_v19, %v311_v20  ;;  %v1132_v20 = vld [vmem:[%s1546_s0 + $0x14] sm:$0xf] }
  0x86   : > { %v326_v22 = vsel %vm238_vm0, %v315_v21, 0  ;;  %v1136_v21 = vld [vmem:[%s1546_s0 + $0x18] sm:$0xf] }
  0x87   : > { %361 = vmatpush.bf16.msrb.mxu1 %v326_v22  ;;  %v981_v22 = vld [vmem:[%s1547_s1] sm:$0xff] }
  0x8a   : > { %1119 = vmatmul.msk.bf16.vlgmr.msrb.gmra.mxu1 %vm234_vm1, %v1116_v23 }
  0x8c   : > { %v481_v24 = vpop.permute.xlu2 %480 }
  0x93   : > { %v391_v25 = vpop.permute.xlu1 %390  ;;  %v305_v26 = vpop.permute.xlu0 %304 }
  0x94   : > { %v483_v27 = vpop.permute.xlu2 %482 }
  0x95   : > { %v487_v38 = vsel %vm484_vm4, %v481_v24, %v483_v27 }
  0x96   : > { %v498_v43 = vsel %vm238_vm0, %v487_v38, 0 }
  0x9b   : > { %v393_v28 = vpop.permute.xlu1 %392  ;;  %v307_v29 = vpop.permute.xlu0 %306 }
  0x9c   : > { %v313_v30 = vsel %vm312_vm2, %v305_v26, %v307_v29  ;;  %v314_v31 = vsel %vm312_vm2, %v307_v29, %v309_v19  ;;  %v399_v32 = vsel %vm398_vm3, %v391_v25, %v393_v28  ;;  %v563_v36 = vpop.permute.xlu2 %562  ;;  %v1314_v25 = vmov 0  }
  0x9d   : > { %v320_v33 = vsel %vm238_vm0, %v313_v30, 0  ;;  %v323_v34 = vsel %vm238_vm0, %v314_v31, 0  ;;  %v406_v35 = vsel %vm238_vm0, %v399_v32, 0  ;;  %1222 = vset.pattern.permute.xlu2 %v1314_v25  ;;  %1223 = vset.pattern.permute.xlu0 %v1314_v25 }
  0x9e   : > { %335 = vmatpush.bf16.msra.mxu3 %v320_v33  ;;  %348 = vmatpush.bf16.msrb.mxu0 %v323_v34 }
  0x9f   : > { %421 = vmatpush.bf16.msrb.mxu2 %v406_v35  ;;  %984 = vperm.xlu2 %1222, %v981_v22  }
  0xa1   : > { %1117 = vmatmul.msk.bf16.vlgmr.msra.gmra.mxu3 %vm234_vm1, %v1116_v23  ;;  %1118 = vmatmul.msk.bf16.vlgmr.msrb.gmra.mxu0 %vm234_vm1, %v1116_v23 }
  0xa2   : > { %1121 = vmatmul.msk.bf16.vlgmr.msrb.gmra.mxu2 %vm234_vm1, %v1120_v37  ;;  %v1479_v31 = vpop.f32.mrf.mxu0 }
  0xa3   : > { %v479_v39 = vpop.permute.xlu1 %478  ;;  %v395_v40 = vpop.permute.xlu0 %394 }
  0xa4   : > { %v486_v41 = vsel %vm484_vm4, %v479_v39, %v481_v24  ;;  %v400_v42 = vsel %vm398_vm3, %v393_v28, %v395_v40  ;;  %v651_v46 = vpop.permute.xlu2 %650  ;;  %v270_v32 = vpop.f32.mrf.mxu1 }
  0xa5   : > { %v495_v44 = vsel %vm238_vm0, %v486_v41, 0  ;;  %v409_v45 = vsel %vm238_vm0, %v400_v42, 0 }
  0xa6   : > { %434 = vmatpush.bf16.msrb.mxu3 %v409_v45  ;;  %520 = vmatpush.bf16.msra.mxu2 %v495_v44 }
  0xaa   : > { %533 = vmatpush.bf16.msra.mxu3 %v498_v43  ;;  %v259_v41 = vpop.f32.mrf.mxu0 }
  0xab   : > { %v477_v47 = vpop.permute.xlu1 %476  ;;  %v397_v48 = vpop.permute.xlu0 %396 }
  0xac   : > { %v485_v49 = vsel %vm484_vm4, %v477_v47, %v479_v39  ;;  %v401_v50 = vsel %vm398_vm3, %v395_v40, %v397_v48  ;;  %v653_v54 = vpop.permute.xlu2 %652  ;;  %v1140_v39 = vld [vmem:[%s1546_s0 + $0x1c] sm:$0xf]  ;;  %v283_v40 = vpop.f32.mrf.mxu2 }
  0xad   : > { %v492_v51 = vsel %vm238_vm0, %v485_v49, 0  ;;  %v412_v52 = vsel %vm238_vm0, %v401_v50, 0  ;;  %v658_v59 = vsel %vm656_vm6, %v651_v46, %v653_v54  ;;  %v272_v42 = vpop.f32.mrf.mxu1  ;;  %v1144_v50 = vld [vmem:[%s1546_s0 + $0x20] sm:$0xf] }
  0xae   : > { %447 = vmatpush.bf16.msra.mxu0 %v412_v52  ;;  %507 = vmatpush.bf16.msra.mxu1 %v492_v51  ;;  %v667_v1 = vsel %vm238_vm0, %v658_v59, 0 }
  0xb1   : > { %1122 = vmatmul.msk.bf16.vlgmr.msrb.gmra.mxu3 %vm234_vm1, %v1120_v37  ;;  %1123 = vmatmul.msk.bf16.vlgmr.msra.gmra.mxu0 %vm234_vm1, %v1120_v37 }
  0xb2   : > { %1125 = vmatmul.msk.bf16.vlgmr.msra.gmra.mxu1 %vm234_vm1, %v1124_v53  ;;  %1126 = vmatmul.msk.bf16.vlgmr.msra.gmra.mxu2 %vm234_vm1, %v1124_v53 }
  0xb3   : > { %v569_v55 = vpop.permute.xlu1 %568  ;;  %v567_v56 = vpop.permute.xlu0 %566 }
  0xb4   : > { %v573_v57 = vsel %vm570_vm5, %v567_v56, %v569_v55  ;;  %v823_v2 = vpop.permute.xlu2 %822  ;;  %v285_v49 = vpop.f32.mrf.mxu2 }
  0xb5   : > { %v584_v58 = vsel %vm238_vm0, %v573_v57, 0 }
  0xb6   : > { %619 = vmatpush.bf16.msrb.mxu2 %v584_v58 }
  0xbb   : > { %v649_v60 = vpop.permute.xlu1 %648  ;;  %v565_v61 = vpop.permute.xlu0 %564 }
  0xbc   : > { %v571_v62 = vsel %vm570_vm5, %v563_v36, %v565_v61  ;;  %v572_v63 = vsel %vm570_vm5, %v565_v61, %v567_v56  ;;  %v657_v0 = vsel %vm656_vm6, %v649_v60, %v651_v46  ;;  %v821_v11 = vpop.permute.xlu2 %820 }
  0xbd   : > { %v578_v3 = vsel %vm238_vm0, %v571_v62, 0  ;;  %v581_v4 = vsel %vm238_vm0, %v572_v63, 0  ;;  %v664_v5 = vsel %vm238_vm0, %v657_v0, 0  ;;  %v829_v12 = vsel %vm828_vm8, %v821_v11, %v823_v2 }
  0xbe   : > { %593 = vmatpush.bf16.msrb.mxu0 %v578_v3  ;;  %606 = vmatpush.bf16.msrb.mxu1 %v581_v4  ;;  %v836_v17 = vsel %vm238_vm0, %v829_v12, 0 }
  0xbf   : > { %679 = vmatpush.bf16.msrb.mxu3 %v664_v5 }
  0xc1   : > { %1127 = vmatmul.msk.bf16.vlgmr.msra.gmra.mxu3 %vm234_vm1, %v1124_v53  ;;  %1129 = vmatmul.msk.bf16.vlgmr.msrb.gmra.mxu0 %vm234_vm1, %v1128_v6 }
  0xc2   : > { %692 = vmatpush.bf16.msra.mxu0 %v667_v1  ;;  %1130 = vmatmul.msk.bf16.vlgmr.msrb.gmra.mxu1 %vm234_vm1, %v1128_v6 }
  0xc3   : > { %1131 = vmatmul.msk.bf16.vlgmr.msrb.gmra.mxu2 %vm234_vm1, %v1128_v6  ;;  %v737_v7 = vpop.permute.xlu1 %736  ;;  %v735_v8 = vpop.permute.xlu0 %734 }
  0xc4   : > { %v743_v9 = vsel %vm742_vm7, %v735_v8, %v737_v7  ;;  %v913_v30 = vpop.permute.xlu2 %912 }
  0xc5   : > { %v750_v10 = vsel %vm238_vm0, %v743_v9, 0 }
  0xc6   : > { %765 = vmatpush.bf16.msra.mxu2 %v750_v10 }
  0xcb   : > { %v739_v13 = vpop.permute.xlu1 %738  ;;  %v655_v14 = vpop.permute.xlu0 %654 }
  0xcc   : > { %v744_v15 = vsel %vm742_vm7, %v737_v7, %v739_v13  ;;  %v659_v16 = vsel %vm656_vm6, %v653_v54, %v655_v14 }
  0xcd   : > { %v753_v18 = vsel %vm238_vm0, %v744_v15, 0  ;;  %v670_v19 = vsel %vm238_vm0, %v659_v16, 0 }
  0xce   : > { %705 = vmatpush.bf16.msra.mxu1 %v670_v19  ;;  %778 = vmatpush.bf16.msra.mxu3 %v753_v18 }
  0xd1   : > { %1133 = vmatmul.msk.bf16.vlgmr.msrb.gmra.mxu3 %vm234_vm1, %v1132_v20  ;;  %1134 = vmatmul.msk.bf16.vlgmr.msra.gmra.mxu0 %vm234_vm1, %v1132_v20 }
  0xd2   : > { %851 = vmatpush.bf16.msrb.mxu1 %v836_v17 }
  0xd3   : > { %1135 = vmatmul.msk.bf16.vlgmr.msra.gmra.mxu1 %vm234_vm1, %v1132_v20  ;;  %1137 = vmatmul.msk.bf16.vlgmr.msra.gmra.mxu2 %vm234_vm1, %v1136_v21  ;;  %v825_v23 = vpop.permute.xlu0 %824  ;;  %v741_v24 = vpop.permute.xlu1 %740 }
  0xd4   : > { %v830_v26 = vsel %vm828_vm8, %v823_v2, %v825_v23  ;;  %v745_v27 = vsel %vm742_vm7, %v739_v13, %v741_v24 }
  0xd5   : > { %v839_v28 = vsel %vm238_vm0, %v830_v26, 0  ;;  %v756_v29 = vsel %vm238_vm0, %v745_v27, 0 }
  0xd6   : > { %791 = vmatpush.bf16.msrb.mxu0 %v756_v29  ;;  %864 = vmatpush.bf16.msrb.mxu2 %v839_v28 }
  0xdb   : > { %v827_v33 = vpop.permute.xlu0 %826  ;;  %v911_v34 = vpop.permute.xlu1 %910 }
  0xdc   : > { %v831_v35 = vsel %vm828_vm8, %v825_v23, %v827_v33  ;;  %v917_v36 = vsel %vm914_vm9, %v911_v34, %v913_v30 }
  0xdd   : > { %v842_v37 = vsel %vm238_vm0, %v831_v35, 0  ;;  %v928_v38 = vsel %vm238_vm0, %v917_v36, 0 }
  0xde   : > { %877 = vmatpush.bf16.msrb.mxu3 %v842_v37  ;;  %963 = vmatpush.bf16.msra.mxu2 %v928_v38 }
  0xe1   : > { %1138 = vmatmul.msk.bf16.vlgmr.msra.gmra.mxu3 %vm234_vm1, %v1136_v21  ;;  %1139 = vmatmul.msk.bf16.vlgmr.msrb.gmra.mxu0 %vm234_vm1, %v1136_v21 }
  0xe3   : > { %1141 = vmatmul.msk.bf16.vlgmr.msrb.gmra.mxu1 %vm234_vm1, %v1140_v39  ;;  %1142 = vmatmul.msk.bf16.vlgmr.msrb.gmra.mxu2 %vm234_vm1, %v1140_v39  ;;  %v909_v43 = vpop.permute.xlu1 %908  ;;  %v907_v44 = vpop.permute.xlu0 %906 }
  0xe4   : > { %v916_v45 = vsel %vm914_vm9, %v909_v43, %v911_v34  ;;  %v915_v46 = vsel %vm914_vm9, %v907_v44, %v909_v43 }
  0xe5   : > { %v925_v47 = vsel %vm238_vm0, %v916_v45, 0  ;;  %v922_v48 = vsel %vm238_vm0, %v915_v46, 0 }
  0xe6   : > { %950 = vmatpush.bf16.msra.mxu1 %v925_v47  ;;  %937 = vmatpush.bf16.msra.mxu0 %v922_v48 }
  0xf1   : > { %1143 = vmatmul.msk.bf16.vlgmr.msrb.gmra.mxu3 %vm234_vm1, %v1140_v39  ;;  %1145 = vmatmul.msk.bf16.vlgmr.msra.gmra.mxu0 %vm234_vm1, %v1144_v50 }
  0xf3   : > { %1146 = vmatmul.msk.bf16.vlgmr.msra.gmra.mxu1 %vm234_vm1, %v1144_v50  ;;  %1147 = vmatmul.msk.bf16.vlgmr.msra.gmra.mxu2 %vm234_vm1, %v1144_v50 }
  0xf9   : > { %v985_v45 = vpop.permute.xlu2 %984 }
 0x107   : > { %v363_v51 = vpop.f32.mrf.mxu1 }
 0x108   : > { %v372_v52 = vadd.f32 %v363_v51, %v283_v40 }
 0x10f   : > { %v365_v53 = vpop.f32.mrf.mxu1 }
 0x11e   : > { %v350_v54 = vpop.f32.mrf.mxu0 }
 0x11f   : > { %v371_v55 = vadd.f32 %v350_v54, %v270_v32 }
 0x124   : > { %v337_v56 = vpop.f32.mrf.mxu3 }
 0x125   : > { %v423_v57 = vpop.f32.mrf.mxu2  ;;  %v370_v20 = vadd.f32 %v337_v56, %v1479_v31 }
 0x126   : > { %v352_v58 = vpop.f32.mrf.mxu0 }
 0x127   : > { %v456_v25 = vadd.f32 %v423_v57, %v370_v20 }
 0x12c   : > { %v339_v59 = vpop.f32.mrf.mxu3 }
 0x12d   : > { %v425_v60 = vpop.f32.mrf.mxu2 }
 0x12e   : > { %v449_v61 = vpop.f32.mrf.mxu0 }
 0x12f   : > { %v509_v62 = vpop.f32.mrf.mxu1  ;;  %v458_v37 = vadd.f32 %v449_v61, %v372_v52 }
 0x130   : > { %v542_v26 = vadd.f32 %v509_v62, %v456_v25 }
 0x134   : > { %v436_v63 = vpop.f32.mrf.mxu3 }
 0x135   : > { %v522_v0 = vpop.f32.mrf.mxu2  ;;  %v457_v24 = vadd.f32 %v436_v63, %v371_v55 }
 0x136   : > { %v451_v1 = vpop.f32.mrf.mxu0 }
 0x137   : > { %v511_v2 = vpop.f32.mrf.mxu1  ;;  %v543_v27 = vadd.f32 %v522_v0, %v457_v24 }
 0x13c   : > { %v438_v3 = vpop.f32.mrf.mxu3 }
 0x13d   : > { %v524_v4 = vpop.f32.mrf.mxu2 }
 0x13e   : > { %v595_v5 = vpop.f32.mrf.mxu0 }
 0x13f   : > { %v608_v6 = vpop.f32.mrf.mxu1  ;;  %v628_v29 = vadd.f32 %v595_v5, %v542_v26 }
 0x140   : > { %v629_v32 = vadd.f32 %v608_v6, %v543_v27 }
 0x144   : > { %v535_v7 = vpop.f32.mrf.mxu3 }
 0x145   : > { %v544_v39 = vadd.f32 %v535_v7, %v458_v37 }
 0x146   : > { %v621_v8 = vpop.f32.mrf.mxu2  ;;  %v597_v9 = vpop.f32.mrf.mxu0 }
 0x147   : > { %v610_v10 = vpop.f32.mrf.mxu1  ;;  %v630_v46 = vadd.f32 %v621_v8, %v544_v39 }
 0x14c   : > { %v537_v11 = vpop.f32.mrf.mxu3 }
 0x14e   : > { %v623_v12 = vpop.f32.mrf.mxu2  ;;  %v694_v13 = vpop.f32.mrf.mxu0 }
 0x14f   : > { %v715_v36 = vadd.f32 %v694_v13, %v629_v32 }
 0x150   : > { %v707_v14 = vpop.f32.mrf.mxu1 }
 0x151   : > { %v716_v50 = vadd.f32 %v707_v14, %v630_v46 }
 0x154   : > { %v681_v15 = vpop.f32.mrf.mxu3 }
 0x155   : > { %v714_v34 = vadd.f32 %v681_v15, %v628_v29 }
 0x156   : > { %v767_v16 = vpop.f32.mrf.mxu2  ;;  %v696_v17 = vpop.f32.mrf.mxu0 }
 0x157   : > { %v800_v31 = vadd.f32 %v767_v16, %v714_v34 }
 0x158   : > { %v709_v18 = vpop.f32.mrf.mxu1 }
 0x15c   : > { %v683_v19 = vpop.f32.mrf.mxu3 }
 0x15e   : > { %v769_v21 = vpop.f32.mrf.mxu2  ;;  %v793_v22 = vpop.f32.mrf.mxu0 }
 0x15f   : > { %v802_v53 = vadd.f32 %v793_v22, %v716_v50 }
 0x160   : > { %v853_v23 = vpop.f32.mrf.mxu1 }
 0x161   : > { %v886_v41 = vadd.f32 %v853_v23, %v800_v31 }
 0x164   : > { %v780_v28 = vpop.f32.mrf.mxu3 }
 0x165   : > { %v801_v38 = vadd.f32 %v780_v28, %v715_v36 }
 0x166   : > { %v866_v30 = vpop.f32.mrf.mxu2  ;;  %v795_v33 = vpop.f32.mrf.mxu0 }
 0x167   : > { %v887_v43 = vadd.f32 %v866_v30, %v801_v38 }
 0x168   : > { %v855_v35 = vpop.f32.mrf.mxu1 }
 0x16c   : > { %v782_v40 = vpop.f32.mrf.mxu3 }
 0x16e   : > { %v868_v42 = vpop.f32.mrf.mxu2  ;;  %v939_v44 = vpop.f32.mrf.mxu0 }
 0x16f   : > { %v972_v47 = vadd.f32 %v939_v44, %v886_v41 }
 0x170   : > { %v952_v48 = vpop.f32.mrf.mxu1 }
 0x171   : > { %v973_v49 = vadd.f32 %v952_v48, %v887_v43  ;;  %v987_v51 = vadd.f32 %v985_v45, %v972_v47 }
 0x173   : > { %v988_v52 = vadd.f32 %v985_v45, %v973_v49  ;;  %990 = vst [vmem:[%s1397_s5] sm:$0xff] %v987_v51 }
 0x174   : > { %v879_v54 = vpop.f32.mrf.mxu3 }
 0x175   : > { %991 = vst [vmem:[%s1397_s5 + $0x8] sm:$0xff] %v988_v52  ;;  %v888_v55 = vadd.f32 %v879_v54, %v802_v53 }
 0x176   : > { %v965_v56 = vpop.f32.mrf.mxu2  ;;  %v941_v57 = vpop.f32.mrf.mxu0 }
 0x177   : > { %v974_v58 = vadd.f32 %v965_v56, %v888_v55 }
 0x178   : > { %v954_v59 = vpop.f32.mrf.mxu1 }
 0x179   : > { %v989_v60 = vadd.f32 %v985_v45, %v974_v58 }
 0x17b   : > { %992 = vst [vmem:[%s1397_s5 + $0x10] sm:$0xff] %v989_v60 }
 0x17c   : > { %v881_v61 = vpop.f32.mrf.mxu3 }
 0x17d   : > { %1251 = shalt.err (!%p1248_p3)
}
 0x17e   : > { %1158 = dma.vmem_to_hbm [thread:$0]  (%p1375_p4), %s1010_s8, 384, %s1012_s15, %s994_s9   ;;  %v967_v62 = vpop.f32.mrf.mxu2 }
 0x17f PF: > { %p1164_p5 = scmp.ge.s32.totalorder %s1304_s17, 2  ;;  %s1023_s26 = sand.u32 1, %s1284_s12  }
 0x180   : > { %s1024_s5 = scalar_lea.sflag [#allocation6], %s1023_s26 }
 0x181   : > { %p1161_p6 = pnand %p1164_p5, %p1382_p8 }
 0x183   : > { %p1162_p7 = pneg %p1161_p6 }
 0x185   : > { %1279 = dma.done.wait (%p1162_p7), %s1024_s5, 384  }
 0x186   : > { %1281 = vsyncadd (%p1162_p7), %s1024_s5, 4294966912  ;;  %s16_s17 = sadd.s32 1, %s1304_s17   ;;  %s1552_s12 = smov %s1288_s13 }
 0x187   : > { %p13_p9 = scmp.ge.s32.totalorder %s16_s17, 4   ;;  %s1553_s13 = smov %s1292_s14 }
 0x188   : > { %s1554_s14 = smov %s1388_s25  ;;  %s1555_s15 = smov %s1300_s16 }
 0x189   : > { %s1556_s16 = smov %s1558_s20  ;;  %15 = sbr.rel (!%p13_p9) target bundleno = 4 (0x4), region = 129 }
 0x18e   :  { %1030 = vsyncpa [#allocation6], 1 }
 0x18f   :  { %1032 = vsyncpa [#allocation6 + $0x1], 1 }
 0x190   :  { %1033 = vsyncmov [#allocation4] }
 0x193   :  { %s1034_s22 = vpop.sfrf %1033 }
 0x194   :  { %p1151_p4 = scmp.ne.s32.totalorder %s1034_s22, 0 }
 0x196   :  { %1038 = shalt.err (%p1151_p4)  }
 0x197   :  { %1040 = vsyncmov [#allocation4 + $0x1] }
 0x19a   :  { %s1041_s24 = vpop.sfrf %1040 }
 0x19b   :  { %p1152_p8 = scmp.ne.s32.totalorder %s1041_s24, 0 }
 0x19d   :  { %1045 = shalt.err (%p1152_p8)  }

</bundles_post_ra>
